<compile_context>
chip_gen: v6e
topology: v6e:2x2x1
jax: 0.10.0
libtpu: 0.0.40
codegen_flags: <defaults>
</compile_context>

<pallas_src>
import jax
import jax.numpy as jnp
from jax.experimental import pallas as pl
from jax.experimental.pallas import tpu as pltpu


# --------------------------------------------------------------------------
# Kernel: 6 tiny bf16 MXU dots (f32 accumulation); bias add + ReLU in f32 on
# the VPU.  All weights/biases are grid-resident (constant index_map).
# --------------------------------------------------------------------------
def combined_net_kernel(x1_ref, x2_ref, x3_ref,
                        w11_ref, b11_ref, w12_ref,
                        w21_ref, b21_ref, w22_ref,
                        w31_ref, b31_ref, w32_ref,
                        b2_ref, o_ref):
    def hidden(x_ref, w1_ref, b1_ref):
        h = jnp.dot(x_ref[...].astype(jnp.bfloat16), w1_ref[...],
                    preferred_element_type=jnp.float32)
        return jnp.maximum(h + b1_ref[...], 0.0).astype(jnp.bfloat16)

    h1 = hidden(x1_ref, w11_ref, b11_ref)
    h2 = hidden(x2_ref, w21_ref, b21_ref)
    h3 = hidden(x3_ref, w31_ref, b31_ref)

    # Second layer: three accumulating dots == the 3-way output sum.
    y = jnp.dot(h1, w12_ref[...], preferred_element_type=jnp.float32)
    y = y + jnp.dot(h2, w22_ref[...], preferred_element_type=jnp.float32)
    y = y + jnp.dot(h3, w32_ref[...], preferred_element_type=jnp.float32)
    o_ref[...] = y + b2_ref[...]          # unpadded (tb, out_dim) f32 store


# --------------------------------------------------------------------------
# One-time parameter preparation (call once; reuse across forward calls).
# --------------------------------------------------------------------------
def pack_params(p):
    bf = jnp.bfloat16
    f32 = jnp.float32
    return dict(
        w11=p["w11"].astype(bf), b11=p["b11"].astype(f32), w12=p["w12"].astype(bf),
        w21=p["w21"].astype(bf), b21=p["b21"].astype(f32), w22=p["w22"].astype(bf),
        w31=p["w31"].astype(bf), b31=p["b31"].astype(f32), w32=p["w32"].astype(bf),
        b2=(p["b12"] + p["b22"] + p["b32"]).astype(f32),
    )


# --------------------------------------------------------------------------
# Batch-tile selection: multiple of 8, divisor of batch, <= cap; prefers a
# grid with >= 2 steps (keeps both v7x TensorCores busy) when batch allows.
# --------------------------------------------------------------------------
def _batch_tile(batch, cap=1024):
    candidates = [t for t in range(8, min(batch, cap) + 1, 8) if batch % t == 0]
    if not candidates:
        return batch                      # small / ragged batch: single full tile
    multi = [t for t in candidates if batch // t >= 2]
    return max(multi) if multi else max(candidates)


# --------------------------------------------------------------------------
# Wrapper
# --------------------------------------------------------------------------
def combined_net(x1, x2, x3, packed):
    batch = x1.shape[0]
    d1, d2, d3 = x1.shape[1], x2.shape[1], x3.shape[1]
    hidden = packed["w11"].shape[1]
    out_dim = packed["w12"].shape[1]

    tb = _batch_tile(batch)
    grid = (pl.cdiv(batch, tb),)

    def resident(shape):
        return pl.BlockSpec(shape, lambda i: (0, 0))

    out = pl.pallas_call(
        combined_net_kernel,
        out_shape=jax.ShapeDtypeStruct((batch, out_dim), jnp.float32),
        grid_spec=pltpu.PrefetchScalarGridSpec(
            num_scalar_prefetch=0,
            grid=grid,
            in_specs=[
                pl.BlockSpec((tb, d1), lambda i: (i, 0)),   # x1 tile
                pl.BlockSpec((tb, d2), lambda i: (i, 0)),   # x2 tile
                pl.BlockSpec((tb, d3), lambda i: (i, 0)),   # x3 tile
                resident((d1, hidden)),                     # w11
                resident((1, hidden)),                      # b11
                resident((hidden, out_dim)),                # w12
                resident((d2, hidden)),                     # w21
                resident((1, hidden)),                      # b21
                resident((hidden, out_dim)),                # w22
                resident((d3, hidden)),                     # w31
                resident((1, hidden)),                      # b31
                resident((hidden, out_dim)),                # w32
                resident((1, out_dim)),                     # b2 (pre-summed)
            ],
            out_specs=pl.BlockSpec((tb, out_dim), lambda i: (i, 0)),
        ),
        compiler_params=pltpu.CompilerParams(
            dimension_semantics=("parallel",)),
    )(x1, x2, x3,
      packed["w11"], packed["b11"], packed["w12"],
      packed["w21"], packed["b21"], packed["w22"],
      packed["w31"], packed["b31"], packed["w32"],
      packed["b2"])
    return out


# --------------------------------------------------------------------------
# Parameter init + fp32 reference (matches the PyTorch module semantics).
# --------------------------------------------------------------------------
def init_params(key, in_dims, hidden, out_dim):
    keys = jax.random.split(key, 12)
    params = {}
    for i, in_dim in enumerate(in_dims, start=1):
        k_w1, k_b1, k_w2, k_b2 = keys[(i - 1) * 4:(i - 1) * 4 + 4]
        params[f"w{i}1"] = (jax.random.normal(k_w1, (in_dim, hidden), jnp.float32)
                            * (1.0 / jnp.sqrt(in_dim)))
        params[f"b{i}1"] = jax.random.normal(k_b1, (1, hidden), jnp.float32) * 0.01
        params[f"w{i}2"] = (jax.random.normal(k_w2, (hidden, out_dim), jnp.float32)
                            * (1.0 / jnp.sqrt(hidden)))
        params[f"b{i}2"] = jax.random.normal(k_b2, (1, out_dim), jnp.float32) * 0.01
    return params


def reference(x1, x2, x3, p):
    def mlp(x, w1, b1, w2, b2):
        h = jnp.maximum(x @ w1 + b1, 0.0)
        return h @ w2 + b2
    return (mlp(x1, p["w11"], p["b11"], p["w12"], p["b12"])
            + mlp(x2, p["w21"], p["b21"], p["w22"], p["b22"])
            + mlp(x3, p["w31"], p["b31"], p["w32"], p["b32"]))


if __name__ == "__main__":
    batch = 8
    in_dims = (32, 16, 24)   # each sub-net may take a differently-sized input
    hidden = 32
    out_dim = 16

    key = jax.random.PRNGKey(0)
    k_p, k1, k2, k3 = jax.random.split(key, 4)
    params = init_params(k_p, in_dims, hidden, out_dim)

    x1 = jax.random.normal(k1, (batch, in_dims[0]), jnp.float32)
    x2 = jax.random.normal(k2, (batch, in_dims[1]), jnp.float32)
    x3 = jax.random.normal(k3, (batch, in_dims[2]), jnp.float32)

    packed = pack_params(params)        # one-time packing, reused per call
    out = combined_net(x1, x2, x3, packed)
    out = jax.block_until_ready(out)

    ref = reference(x1, x2, x3, params)
    assert out.shape == (batch, out_dim)
    # Tolerance relaxed for the bf16 MXU path (f32 accumulation).
    assert jnp.allclose(out, ref, atol=5e-2, rtol=5e-2), (
        float(jnp.max(jnp.abs(out - ref))))

    print("KERNEL_OK")
</pallas_src>

<mosaic_0001>
module attributes {stable_mosaic.version = 11 : i64} {
  func.func @combined_net_kernel(%arg0: i32, %arg1: memref<8x32xf32, #tpu.memory_space<vmem>>, %arg2: memref<8x16xf32, #tpu.memory_space<vmem>>, %arg3: memref<8x24xf32, #tpu.memory_space<vmem>>, %arg4: memref<32x32xbf16, #tpu.memory_space<vmem>>, %arg5: memref<1x32xf32, #tpu.memory_space<vmem>>, %arg6: memref<32x16xbf16, #tpu.memory_space<vmem>>, %arg7: memref<16x32xbf16, #tpu.memory_space<vmem>>, %arg8: memref<1x32xf32, #tpu.memory_space<vmem>>, %arg9: memref<32x16xbf16, #tpu.memory_space<vmem>>, %arg10: memref<24x32xbf16, #tpu.memory_space<vmem>>, %arg11: memref<1x32xf32, #tpu.memory_space<vmem>>, %arg12: memref<32x16xbf16, #tpu.memory_space<vmem>>, %arg13: memref<1x16xf32, #tpu.memory_space<vmem>>, %arg14: memref<8x16xf32, #tpu.memory_space<vmem>>) attributes {dimension_semantics = [#tpu.dimension_semantics<parallel>], iteration_bounds = array<i64: 1>, scalar_prefetch = 0 : i64, scratch_operands = 0 : i64, tpu.core_type = #tpu.core_type<tc>, window_params = [{transform_indices = @transform_0, window_bounds = array<i64: 8, 32>}, {transform_indices = @transform_1, window_bounds = array<i64: 8, 16>}, {transform_indices = @transform_2, window_bounds = array<i64: 8, 24>}, {pipeline_mode = #tpu.pipeline_mode<synchronous>, transform_indices = @transform_3, window_bounds = array<i64: 32, 32>}, {pipeline_mode = #tpu.pipeline_mode<synchronous>, transform_indices = @transform_4, window_bounds = array<i64: 1, 32>}, {pipeline_mode = #tpu.pipeline_mode<synchronous>, transform_indices = @transform_5, window_bounds = array<i64: 32, 16>}, {pipeline_mode = #tpu.pipeline_mode<synchronous>, transform_indices = @transform_6, window_bounds = array<i64: 16, 32>}, {pipeline_mode = #tpu.pipeline_mode<synchronous>, transform_indices = @transform_7, window_bounds = array<i64: 1, 32>}, {pipeline_mode = #tpu.pipeline_mode<synchronous>, transform_indices = @transform_8, window_bounds = array<i64: 32, 16>}, {pipeline_mode = #tpu.pipeline_mode<synchronous>, transform_indices = @transform_9, window_bounds = array<i64: 24, 32>}, {pipeline_mode = #tpu.pipeline_mode<synchronous>, transform_indices = @transform_10, window_bounds = array<i64: 1, 32>}, {pipeline_mode = #tpu.pipeline_mode<synchronous>, transform_indices = @transform_11, window_bounds = array<i64: 32, 16>}, {pipeline_mode = #tpu.pipeline_mode<synchronous>, transform_indices = @transform_12, window_bounds = array<i64: 1, 16>}, {transform_indices = @transform_13, window_bounds = array<i64: 8, 16>}]} {
    %c0 = arith.constant 0 : index
    %c0_0 = arith.constant 0 : index
    %0 = vector.load %arg1[%c0, %c0_0] : memref<8x32xf32, #tpu.memory_space<vmem>>, vector<8x32xf32>
    %1 = arith.truncf %0 : vector<8x32xf32> to vector<8x32xbf16>
    %c0_1 = arith.constant 0 : index
    %c0_2 = arith.constant 0 : index
    %2 = vector.load %arg4[%c0_1, %c0_2] : memref<32x32xbf16, #tpu.memory_space<vmem>>, vector<32x32xbf16>
    %cst = arith.constant dense<0.000000e+00> : vector<8x32xf32>
    %3 = tpu.matmul %1, %2, %cst {dimension_numbers = #tpu.dot_dimension_numbers<[1], [0], [0], [1], [0, 0, 1, 1], [], []>} : vector<8x32xbf16>, vector<32x32xbf16>, vector<8x32xf32> -> vector<8x32xf32>
    %c0_3 = arith.constant 0 : index
    %c0_4 = arith.constant 0 : index
    %4 = vector.load %arg5[%c0_3, %c0_4] : memref<1x32xf32, #tpu.memory_space<vmem>>, vector<1x32xf32>
    %5 = vector.broadcast %4 : vector<1x32xf32> to vector<8x32xf32>
    %6 = arith.addf %3, %5 : vector<8x32xf32>
    %cst_5 = arith.constant 0.000000e+00 : f32
    %7 = vector.broadcast %cst_5 : f32 to vector<8x32xf32>
    %8 = arith.maximumf %6, %7 : vector<8x32xf32>
    %9 = arith.truncf %8 : vector<8x32xf32> to vector<8x32xbf16>
    %c0_6 = arith.constant 0 : index
    %c0_7 = arith.constant 0 : index
    %10 = vector.load %arg2[%c0_6, %c0_7] : memref<8x16xf32, #tpu.memory_space<vmem>>, vector<8x16xf32>
    %11 = arith.truncf %10 : vector<8x16xf32> to vector<8x16xbf16>
    %c0_8 = arith.constant 0 : index
    %c0_9 = arith.constant 0 : index
    %12 = vector.load %arg7[%c0_8, %c0_9] : memref<16x32xbf16, #tpu.memory_space<vmem>>, vector<16x32xbf16>
    %cst_10 = arith.constant dense<0.000000e+00> : vector<8x32xf32>
    %13 = tpu.matmul %11, %12, %cst_10 {dimension_numbers = #tpu.dot_dimension_numbers<[1], [0], [0], [1], [0, 0, 1, 1], [], []>} : vector<8x16xbf16>, vector<16x32xbf16>, vector<8x32xf32> -> vector<8x32xf32>
    %c0_11 = arith.constant 0 : index
    %c0_12 = arith.constant 0 : index
    %14 = vector.load %arg8[%c0_11, %c0_12] : memref<1x32xf32, #tpu.memory_space<vmem>>, vector<1x32xf32>
    %15 = vector.broadcast %14 : vector<1x32xf32> to vector<8x32xf32>
    %16 = arith.addf %13, %15 : vector<8x32xf32>
    %cst_13 = arith.constant 0.000000e+00 : f32
    %17 = vector.broadcast %cst_13 : f32 to vector<8x32xf32>
    %18 = arith.maximumf %16, %17 : vector<8x32xf32>
    %19 = arith.truncf %18 : vector<8x32xf32> to vector<8x32xbf16>
    %c0_14 = arith.constant 0 : index
    %c0_15 = arith.constant 0 : index
    %20 = vector.load %arg3[%c0_14, %c0_15] : memref<8x24xf32, #tpu.memory_space<vmem>>, vector<8x24xf32>
    %21 = arith.truncf %20 : vector<8x24xf32> to vector<8x24xbf16>
    %c0_16 = arith.constant 0 : index
    %c0_17 = arith.constant 0 : index
    %22 = vector.load %arg10[%c0_16, %c0_17] : memref<24x32xbf16, #tpu.memory_space<vmem>>, vector<24x32xbf16>
    %cst_18 = arith.constant dense<0.000000e+00> : vector<8x32xf32>
    %23 = tpu.matmul %21, %22, %cst_18 {dimension_numbers = #tpu.dot_dimension_numbers<[1], [0], [0], [1], [0, 0, 1, 1], [], []>} : vector<8x24xbf16>, vector<24x32xbf16>, vector<8x32xf32> -> vector<8x32xf32>
    %c0_19 = arith.constant 0 : index
    %c0_20 = arith.constant 0 : index
    %24 = vector.load %arg11[%c0_19, %c0_20] : memref<1x32xf32, #tpu.memory_space<vmem>>, vector<1x32xf32>
    %25 = vector.broadcast %24 : vector<1x32xf32> to vector<8x32xf32>
    %26 = arith.addf %23, %25 : vector<8x32xf32>
    %cst_21 = arith.constant 0.000000e+00 : f32
    %27 = vector.broadcast %cst_21 : f32 to vector<8x32xf32>
    %28 = arith.maximumf %26, %27 : vector<8x32xf32>
    %29 = arith.truncf %28 : vector<8x32xf32> to vector<8x32xbf16>
    %c0_22 = arith.constant 0 : index
    %c0_23 = arith.constant 0 : index
    %30 = vector.load %arg6[%c0_22, %c0_23] : memref<32x16xbf16, #tpu.memory_space<vmem>>, vector<32x16xbf16>
    %cst_24 = arith.constant dense<0.000000e+00> : vector<8x16xf32>
    %31 = tpu.matmul %9, %30, %cst_24 {dimension_numbers = #tpu.dot_dimension_numbers<[1], [0], [0], [1], [0, 0, 1, 1], [], []>} : vector<8x32xbf16>, vector<32x16xbf16>, vector<8x16xf32> -> vector<8x16xf32>
    %c0_25 = arith.constant 0 : index
    %c0_26 = arith.constant 0 : index
    %32 = vector.load %arg9[%c0_25, %c0_26] : memref<32x16xbf16, #tpu.memory_space<vmem>>, vector<32x16xbf16>
    %cst_27 = arith.constant dense<0.000000e+00> : vector<8x16xf32>
    %33 = tpu.matmul %19, %32, %cst_27 {dimension_numbers = #tpu.dot_dimension_numbers<[1], [0], [0], [1], [0, 0, 1, 1], [], []>} : vector<8x32xbf16>, vector<32x16xbf16>, vector<8x16xf32> -> vector<8x16xf32>
    %34 = arith.addf %31, %33 : vector<8x16xf32>
    %c0_28 = arith.constant 0 : index
    %c0_29 = arith.constant 0 : index
    %35 = vector.load %arg12[%c0_28, %c0_29] : memref<32x16xbf16, #tpu.memory_space<vmem>>, vector<32x16xbf16>
    %cst_30 = arith.constant dense<0.000000e+00> : vector<8x16xf32>
    %36 = tpu.matmul %29, %35, %cst_30 {dimension_numbers = #tpu.dot_dimension_numbers<[1], [0], [0], [1], [0, 0, 1, 1], [], []>} : vector<8x32xbf16>, vector<32x16xbf16>, vector<8x16xf32> -> vector<8x16xf32>
    %37 = arith.addf %34, %36 : vector<8x16xf32>
    %c0_31 = arith.constant 0 : index
    %c0_32 = arith.constant 0 : index
    %38 = vector.load %arg13[%c0_31, %c0_32] : memref<1x16xf32, #tpu.memory_space<vmem>>, vector<1x16xf32>
    %39 = vector.broadcast %38 : vector<1x16xf32> to vector<8x16xf32>
    %40 = arith.addf %37, %39 : vector<8x16xf32>
    %c0_33 = arith.constant 0 : index
    %c0_34 = arith.constant 0 : index
    %41 = vector.load %arg14[%c0_33, %c0_34] : memref<8x16xf32, #tpu.memory_space<vmem>>, vector<8x16xf32>
    tpu.vector_store %arg14[%c0_33, %c0_34], %40 {strides = array<i32>} : memref<8x16xf32, #tpu.memory_space<vmem>>, vector<8x16xf32>,
    return
  }
  func.func @transform_0(%arg0: i32) -> (i32, i32) {
    %c0_i32 = arith.constant 0 : i32
    %c0_i32_0 = arith.constant 0 : i32
    return %arg0, %c0_i32 : i32, i32
  }
  func.func @transform_1(%arg0: i32) -> (i32, i32) {
    %c0_i32 = arith.constant 0 : i32
    %c0_i32_0 = arith.constant 0 : i32
    return %arg0, %c0_i32 : i32, i32
  }
  func.func @transform_2(%arg0: i32) -> (i32, i32) {
    %c0_i32 = arith.constant 0 : i32
    %c0_i32_0 = arith.constant 0 : i32
    return %arg0, %c0_i32 : i32, i32
  }
  func.func @transform_3(%arg0: i32) -> (i32, i32) {
    %c0_i32 = arith.constant 0 : i32
    %c0_i32_0 = arith.constant 0 : i32
    %c0_i32_1 = arith.constant 0 : i32
    return %c0_i32, %c0_i32_0 : i32, i32
  }
  func.func @transform_4(%arg0: i32) -> (i32, i32) {
    %c0_i32 = arith.constant 0 : i32
    %c0_i32_0 = arith.constant 0 : i32
    %c0_i32_1 = arith.constant 0 : i32
    return %c0_i32, %c0_i32_0 : i32, i32
  }
  func.func @transform_5(%arg0: i32) -> (i32, i32) {
    %c0_i32 = arith.constant 0 : i32
    %c0_i32_0 = arith.constant 0 : i32
    %c0_i32_1 = arith.constant 0 : i32
    return %c0_i32, %c0_i32_0 : i32, i32
  }
  func.func @transform_6(%arg0: i32) -> (i32, i32) {
    %c0_i32 = arith.constant 0 : i32
    %c0_i32_0 = arith.constant 0 : i32
    %c0_i32_1 = arith.constant 0 : i32
    return %c0_i32, %c0_i32_0 : i32, i32
  }
  func.func @transform_7(%arg0: i32) -> (i32, i32) {
    %c0_i32 = arith.constant 0 : i32
    %c0_i32_0 = arith.constant 0 : i32
    %c0_i32_1 = arith.constant 0 : i32
    return %c0_i32, %c0_i32_0 : i32, i32
  }
  func.func @transform_8(%arg0: i32) -> (i32, i32) {
    %c0_i32 = arith.constant 0 : i32
    %c0_i32_0 = arith.constant 0 : i32
    %c0_i32_1 = arith.constant 0 : i32
    return %c0_i32, %c0_i32_0 : i32, i32
  }
  func.func @transform_9(%arg0: i32) -> (i32, i32) {
    %c0_i32 = arith.constant 0 : i32
    %c0_i32_0 = arith.constant 0 : i32
    %c0_i32_1 = arith.constant 0 : i32
    return %c0_i32, %c0_i32_0 : i32, i32
  }
  func.func @transform_10(%arg0: i32) -> (i32, i32) {
    %c0_i32 = arith.constant 0 : i32
    %c0_i32_0 = arith.constant 0 : i32
    %c0_i32_1 = arith.constant 0 : i32
    return %c0_i32, %c0_i32_0 : i32, i32
  }
  func.func @transform_11(%arg0: i32) -> (i32, i32) {
    %c0_i32 = arith.constant 0 : i32
    %c0_i32_0 = arith.constant 0 : i32
    %c0_i32_1 = arith.constant 0 : i32
    return %c0_i32, %c0_i32_0 : i32, i32
  }
  func.func @transform_12(%arg0: i32) -> (i32, i32) {
    %c0_i32 = arith.constant 0 : i32
    %c0_i32_0 = arith.constant 0 : i32
    %c0_i32_1 = arith.constant 0 : i32
    return %c0_i32, %c0_i32_0 : i32, i32
  }
  func.func @transform_13(%arg0: i32) -> (i32, i32) {
    %c0_i32 = arith.constant 0 : i32
    %c0_i32_0 = arith.constant 0 : i32
    return %arg0, %c0_i32 : i32, i32
  }
}

</mosaic_0001>

<bundles_post_ra>
// kernel: tpu_custom_call.1
= control target key start
LH: loop header
LB: loop body
LE: loop exit
PB: predicated region body
PF: predicated region fallthrough
CT: control target
= control target key end

     0   :  { %18 = vsyncpa [#allocation3], 0  ;;  %s774_s0 = inlined_call_operand.vmem [shape: f32[8,32], index: 0, kind: input, shape index: {}]   ;;  %s775_s1 = inlined_call_operand.vmem [shape: f32[8,16], index: 1, kind: input, shape index: {}]   ;;  %s776_s2 = inlined_call_operand.vmem [shape: f32[8,24], index: 2, kind: input, shape index: {}]   ;;  %s777_s3 = inlined_call_operand.vmem [shape: bf16[32,32], index: 3, kind: input, shape index: {}]   ;;  %s778_s4 = inlined_call_operand.vmem [shape: f32[1,32], index: 4, kind: input, shape index: {}]   ;;  %s779_s5 = inlined_call_operand.vmem [shape: bf16[32,16], index: 5, kind: input, shape index: {}]   ;;  %s780_s6 = inlined_call_operand.hbm [shape: bf16[16,32], index: 6, kind: input, shape index: {}]   ;;  %s781_s7 = inlined_call_operand.vmem [shape: f32[1,32], index: 7, kind: input, shape index: {}]   ;;  %s782_s8 = inlined_call_operand.vmem [shape: bf16[32,16], index: 8, kind: input, shape index: {}]   ;;  %s783_s9 = inlined_call_operand.vmem [shape: bf16[24,32], index: 9, kind: input, shape index: {}]   ;;  %s784_s10 = inlined_call_operand.vmem [shape: f32[1,32], index: 10, kind: input, shape index: {}]   ;;  %s785_s11 = inlined_call_operand.vmem [shape: bf16[32,16], index: 11, kind: input, shape index: {}]   ;;  %s786_s12 = inlined_call_operand.vmem [shape: f32[1,16], index: 12, kind: input, shape index: {}]   ;;  %s787_s13 = inlined_call_operand.hbm [shape: f32[8,16], index: 13, kind: output, shape index: {}]  }
   0x1   :  { %19 = vsyncpa [#allocation4], 0  ;;  %s612_s25 = smov [#allocation2]  }
   0x2   :  { %s37_s26 = sshll.u32 %s612_s25, 4  ;;  %s38_s26 = int_to_ptr.vmem [resolvable:$true] %s37_s26 }
   0x3   :  { %s576_s27 = scalar_lea.vmem %s38_s26, 128  ;;  %p581_p1 = scmp.lt.s32.totalorder %s38_s26, %s38_s26 }
   0x4   :  { %p577_p0 = scmp.ne.s32.totalorder %s38_s26, %s576_s27  ;;  %p582_p2 = scmp.lt.s32.totalorder %s576_s27, %s576_s27 }
   0x6   :  { %p583_p3 = por %p582_p2, %p581_p1 }
   0x8   :  { %p584_p4 = pnand %p583_p3, %p577_p0 }
   0xa   :  { %587 = shalt.err (!%p584_p4)
}
   0xb   :  { %s613_s28 = smov 64   ;;  %s614_s29 = smov 4  }
   0xc   :  { %43 = dma.hbm_to_vmem [thread:$0]  %s780_s6, 128, %s38_s26, [#allocation3], %s613_s28, %s613_s28, %s614_s29  }
   0xd   :  { %608 = dma.done.wait [#allocation3], 128  }
   0xe   :  { %609 = vsyncadd [#allocation3], 4294967168  ;;  %v615_v0 = vmov 0.0   ;;  %vm616_vm0 = vmmov 0   ;;  %v557_v1 = vld [vmem:[%s777_s3 + $0x8] sm:$0xff]   ;;  %v558_v2 = vld [vmem:[#allocation2] sm:$0xff]  }
   0xf   :  { %505 = vmatprep.subr.bf16.mxu0 %v615_v0  ;;  %513 = vmatprep.subr.bf16.mxu1 %v615_v0  ;;  %v131_v3 = vld [vmem:[%s775_s1] sm:$0xff]  ;;  %vm219_vm1 = vcmask 1043456   ;;  %vm148_vm2 = vcmask 130048   ;;  %v560_v6 = vld [vmem:[%s783_s9 + $0x8] ss:$0 sps:$4 sm:$0xff]   ;;  %vm85_vm3 = vcmask 261120  }
  0x10   :  { %515 = vmatprep.mubr.msk.bf16.mxu1 %vm616_vm0, %v615_v0  ;;  %509 = vmatprep.mubr.msk.bf16.mxu0 %vm616_vm0, %v615_v0  ;;  %v132_v4 = vpack.c.bf16 %v131_v3, %v131_v3  ;;  %v559_v5 = vld [vmem:[%s777_s3] sm:$0xff]   ;;  %v221_v8 = vsel %vm219_vm1, %v560_v6, 0  ;;  %vm215_vm4 = vcmask 195584   ;;  %v562_v13 = vld [vmem:[%s782_s8 + $0x8] sm:$0xff]   ;;  %s617_s19 = smov [#allocation5]  }
  0x11   :  { %506 = vmatpush3.bf16.msra.mxu0 %v557_v1  ;;  %514 = vmatpush3.bf16.msra.mxu1 %v558_v2  ;;  %v60_v7 = vld [vmem:[%s774_s0] sm:$0xff]  ;;  %v564_v15 = vld [vmem:[%s779_s5 + $0x8] sm:$0xff]   ;;  %s458_s20 = sshll.u32 %s617_s19, 4  ;;  %s459_s20 = int_to_ptr.vmem [resolvable:$true] %s458_s20 }
  0x12   :  { %507 = vmatprep.subr.bf16.mxu0 %v615_v0  ;;  %519 = vmatprep.subr.bf16.mxu1 %v615_v0  ;;  %v61_v9 = vpack.c.bf16 %v60_v7, %v60_v7  ;;  %v561_v10 = vld [vmem:[%s783_s9] sm:$0xff]   ;;  %v566_v26 = vld [vmem:[%s785_s11 + $0x8] sm:$0xff]   ;;  %s588_s21 = scalar_lea.vmem %s459_s20, 128  ;;  %p593_p6 = scmp.lt.s32.totalorder %s459_s20, %s459_s20 }
  0x13   :  { %v194_v11 = vld [vmem:[%s776_s2] sm:$0xff]  ;;  %p589_p5 = scmp.ne.s32.totalorder %s459_s20, %s588_s21  ;;  %p594_p7 = scmp.lt.s32.totalorder %s588_s21, %s588_s21 }
  0x14   :  { %516 = vmatmul.mubr.msk.bf16.vlgmr.msra.gmra.mxu1 %vm148_vm2, %v132_v4  ;;  %v195_v12 = vpack.c.bf16 %v194_v11, %v194_v11  ;;  %v563_v14 = vld [vmem:[%s782_s8] sm:$0xff]  }
  0x15   :  { %508 = vmatpush3.bf16.msra.mxu0 %v559_v5  ;;  %520 = vmatpush3.bf16.msra.mxu1 %v221_v8  ;;  %v565_v16 = vld [vmem:[%s779_s5] sm:$0xff]   ;;  %p595_p8 = por %p594_p7, %p593_p6 }
  0x16   :  { %523 = vmatprep.mubr.msk.bf16.mxu1 %vm616_vm0, %v615_v0  ;;  %521 = vmatprep.subr.bf16.mxu1 %v615_v0  ;;  %v471_v17 = vld [vmem:[%s781_s7] ss:$0 sm:$0xff] }
  0x17   :  { %527 = vmatprep.subr.bf16.mxu0 %v615_v0  ;;  %v467_v20 = vld [vmem:[%s778_s4] ss:$0 sm:$0xff]  ;;  %p596_p9 = pnand %p595_p8, %p589_p5 }
  0x18   :  { %510 = vmatmul.mubr.msk.bf16.vlgmr.msra.gmra.mxu0 %vm85_vm3, %v61_v9  ;;  %v474_v31 = vld [vmem:[%s784_s10] ss:$0 sm:$0xff] }
  0x19   :  { %531 = vmatprep.mubr.msk.bf16.mxu0 %vm616_vm0, %v615_v0  ;;  %522 = vmatpush3.bf16.msra.mxu1 %v561_v10  ;;  %v567_v35 = vld [vmem:[%s785_s11] sm:$0xff]  }
  0x1a   :  { %535 = vmatprep.subr.bf16.mxu1 %v615_v0  ;;  %528 = vmatpush3.bf16.msra.mxu0 %v562_v13  ;;  %v487_v52 = vld [vmem:[%s786_s12] ss:$0 sm:$0xff] }
  0x1b   :  { %529 = vmatprep.subr.bf16.mxu0 %v615_v0 }
  0x1c   :  { %524 = vmatmul.mubr.msk.bf16.vlgmr.msra.gmra.mxu1 %vm215_vm4, %v195_v12 }
  0x1d   :  { %539 = vmatprep.mubr.msk.bf16.mxu1 %vm616_vm0, %v615_v0  ;;  %536 = vmatpush3.bf16.msra.mxu1 %v564_v15 }
  0x1e   :  { %530 = vmatpush3.bf16.msra.mxu0 %v563_v14  ;;  %537 = vmatprep.subr.bf16.mxu1 %v615_v0 }
  0x1f   :  { %543 = vmatprep.subr.bf16.mxu0 %v615_v0 }
  0x21   :  { %538 = vmatpush3.bf16.msra.mxu1 %v565_v16 }
  0xd4   :  { %v186_v18 = vpop.f32.mrf.mxu1 }
  0xd5   :  { %v187_v19 = vadd.f32 %v471_v17, %v186_v18 }
  0xd6   :  { %v517_v21 = vpop.f32.mrf.mxu1 }
  0xd7   :  { %v192_v22 = vmax.f32 %v187_v19, 0.0 }
  0xd8   :  { %v123_v23 = vpop.f32.mrf.mxu0  ;;  %v189_v25 = vpop.f32.mrf.mxu1 }
  0xd9   :  { %v124_v24 = vadd.f32 %v467_v20, %v123_v23  ;;  %v193_v27 = vpack.c.bf16 %v192_v22, %v192_v22 }
  0xda   :  { %v511_v28 = vpop.f32.mrf.mxu0  ;;  %v518_v30 = vpop.f32.mrf.mxu1 }
  0xdb   :  { %v129_v29 = vmax.f32 %v124_v24, 0.0  ;;  %532 = vmatmul.mubr.msk.bf16.vlgmr.msra.gmra.mxu0 %vm85_vm3, %v193_v27 }
  0xdc   :  { %v126_v32 = vpop.f32.mrf.mxu0  ;;  %v257_v34 = vpop.f32.mrf.mxu1  ;;  %544 = vmatpush3.bf16.msra.mxu0 %v566_v26  ;;  %547 = vmatprep.mubr.msk.bf16.mxu0 %vm616_vm0, %v615_v0 }
  0xdd   :  { %v130_v33 = vpack.c.bf16 %v129_v29, %v129_v29  ;;  %v258_v36 = vadd.f32 %v474_v31, %v257_v34  ;;  %545 = vmatprep.subr.bf16.mxu0 %v615_v0 }
  0xde   :  { %v512_v37 = vpop.f32.mrf.mxu0  ;;  %v525_v38 = vpop.f32.mrf.mxu1 }
  0xdf   :  { %540 = vmatmul.mubr.msk.bf16.vlgmr.msra.gmra.mxu1 %vm85_vm3, %v130_v33  ;;  %v263_v39 = vmax.f32 %v258_v36, 0.0 }
  0xe0   :  { %v260_v40 = vpop.f32.mrf.mxu1  ;;  %546 = vmatpush3.bf16.msra.mxu0 %v567_v35 }
  0xe1   :  { %v264_v41 = vpack.c.bf16 %v263_v39, %v263_v39 }
  0xe2   :  { %v526_v42 = vpop.f32.mrf.mxu1 }
  0xe3   :  { %548 = vmatmul.mubr.msk.bf16.vlgmr.msra.gmra.mxu0 %vm85_vm3, %v264_v41 }
 0x19b   :  { %v322_v43 = vpop.f32.mrf.mxu0 }
 0x19d   :  { %v533_v44 = vpop.f32.mrf.mxu0 }
 0x19f   :  { %v377_v45 = vpop.f32.mrf.mxu1  ;;  %v325_v46 = vpop.f32.mrf.mxu0 }
 0x1a0   :  { %v378_v49 = vadd.f32 %v377_v45, %v322_v43 }
 0x1a1   :  { %v541_v47 = vpop.f32.mrf.mxu1  ;;  %v534_v48 = vpop.f32.mrf.mxu0 }
 0x1a3   :  { %v380_v50 = vpop.f32.mrf.mxu1  ;;  %v436_v51 = vpop.f32.mrf.mxu0 }
 0x1a4   :  { %v442_v53 = vadd.f32 %v436_v51, %v378_v49 }
 0x1a5   :  { %v542_v54 = vpop.f32.mrf.mxu1  ;;  %v549_v55 = vpop.f32.mrf.mxu0 }
 0x1a6   :  { %v450_v56 = vadd.f32 %v487_v52, %v442_v53 }
 0x1a7   :  { %v439_v57 = vpop.f32.mrf.mxu0 }
 0x1a8   :  { %451 = vst.msk [vmem:[#allocation5] sm:$0xff] %vm148_vm2, %v450_v56 }
 0x1a9   :  { %v550_v58 = vpop.f32.mrf.mxu0 }
 0x1aa   :  { %599 = shalt.err (!%p596_p9)
}
 0x1ab   :  { %461 = dma.vmem_to_hbm [thread:$0]  %s459_s20, 128, %s787_s13, [#allocation4]  }
 0x1ac   :  { %610 = dma.done.wait [#allocation4], 128  }
 0x1ad   :  { %611 = vsyncadd [#allocation4], 4294967168 }
 0x1ae   :  { %465 = vsyncpa [#allocation3], 1 }
 0x1af   :  { %466 = vsyncpa [#allocation4], 1 }

</bundles_post_ra>
